<compile_context>
chip_gen: v7x
topology: tpu7x:2x2x1
jax: 0.10.0
libtpu: 0.0.40
codegen_flags: <defaults>
</compile_context>

<pallas_src>
import functools

import numpy as np
import jax
import jax.numpy as jnp
from jax.experimental import pallas as pl
from jax.experimental.pallas import tpu as pltpu

_LANE = 128
_SUBLANE = 8


def _round_up(x, m):
    return ((x + m - 1) // m) * m


def _second_module_kernel(i_ref, c_ref, wi_ref, wc_ref, b_ref, o_ref):
    """One (TS, *) sequence tile: o = c * sigmoid(i @ Wi + c @ Wc + b)."""
    compute_dtype = wi_ref.dtype
    c_f32 = c_ref[...].astype(jnp.float32)

    # Fused-concat matmul on the MXU with f32 accumulation.
    logits = jnp.dot(i_ref[...].astype(compute_dtype), wi_ref[...],
                     preferred_element_type=jnp.float32)
    logits = logits + jnp.dot(c_ref[...].astype(compute_dtype), wc_ref[...],
                              preferred_element_type=jnp.float32)
    logits = logits + b_ref[...]                      # single bias add

    # sigmoid(x) = 0.5 * (tanh(x/2) + 1)  -- tanh goes to the EUP slot.
    og = 0.5 * (jnp.tanh(0.5 * logits) + 1.0)
    o_ref[...] = (c_f32 * og).astype(o_ref.dtype)


def prepare_params(weight, bias, input_size, *, compute_dtype=jnp.bfloat16):
    """One-time (init-time) parameter prep: split W into (Wi, Wc), transpose,
    zero-pad to lane-dense multiples of 128, cast matmul weights to the compute
    dtype.  weight: (O, I+H) as in nn.Linear(I+H, O); bias: (O,)."""
    O, IH = weight.shape
    I = input_size
    H = IH - I
    Ip, Hp, Op = _round_up(I, _LANE), _round_up(H, _LANE), _round_up(O, _LANE)

    w_i = jnp.zeros((Ip, Op), compute_dtype)
    w_i = w_i.at[:I, :O].set(jnp.transpose(weight[:, :I]).astype(compute_dtype))
    w_c = jnp.zeros((Hp, Op), compute_dtype)
    w_c = w_c.at[:H, :O].set(jnp.transpose(weight[:, I:]).astype(compute_dtype))
    b2d = jnp.zeros((1, Op), jnp.float32)
    b2d = b2d.at[0, :O].set(bias.astype(jnp.float32))
    return w_i, w_c, b2d


@functools.partial(jax.jit, static_argnames=("tile_s",))
def second_module_forward(i_vectors, c_vectors, w_i, w_c, b2d, *, tile_s=512):
    """i_vectors: (S, I), c_vectors: (S, H); params from prepare_params.
    Returns o = c * sigmoid([i, c] @ W.T + b), shape (S, H) (requires O == H)."""
    S, I = i_vectors.shape
    Sc, H = c_vectors.shape
    assert Sc == S
    Ip, Op = w_i.shape
    Hp = w_c.shape[0]
    assert I <= Ip and H <= Hp
    # Module semantics (c * og) require output_size == hidden_size.
    assert Op == Hp and H <= Op

    out_dtype = i_vectors.dtype

    # Sequence tiling: sublane-aligned, capped at tile_s (>=512 recommended).
    TS = max(_SUBLANE,
             min(_round_up(tile_s, _SUBLANE), _round_up(S, _SUBLANE)))
    Sp = _round_up(S, TS)

    i_p = jnp.pad(i_vectors, ((0, Sp - S), (0, Ip - I)))
    c_p = jnp.pad(c_vectors, ((0, Sp - S), (0, Hp - H)))

    # VMEM budget: double-buffered streamed tiles + resident weights + headroom.
    act_b = i_vectors.dtype.itemsize
    w_b = w_i.dtype.itemsize
    out_b = out_dtype.itemsize
    vmem_bytes = int(2 * TS * (Ip * act_b + Hp * act_b + Op * out_b)
                     + 2 * (Ip + Hp) * Op * w_b + 2 * Op * 4
                     + (8 << 20))

    out_padded = pl.pallas_call(
        _second_module_kernel,
        out_shape=jax.ShapeDtypeStruct((Sp, Op), out_dtype),
        grid_spec=pltpu.PrefetchScalarGridSpec(
            num_scalar_prefetch=0,
            grid=(Sp // TS,),
            in_specs=[
                pl.BlockSpec((TS, Ip), lambda s: (s, 0)),  # streamed i tile
                pl.BlockSpec((TS, Hp), lambda s: (s, 0)),  # streamed c tile
                pl.BlockSpec((Ip, Op), lambda s: (0, 0)),  # resident Wi
                pl.BlockSpec((Hp, Op), lambda s: (0, 0)),  # resident Wc
                pl.BlockSpec((1, Op), lambda s: (0, 0)),   # resident bias
            ],
            out_specs=pl.BlockSpec((TS, Op), lambda s: (s, 0)),
        ),
        compiler_params=pltpu.CompilerParams(
            dimension_semantics=("parallel",),
            vmem_limit_bytes=vmem_bytes,
        ),
    )(i_p, c_p, w_i, w_c, b2d)

    return out_padded[:S, :H]


def _reference(i_vectors, c_vectors, weight, bias):
    ic = jnp.concatenate([i_vectors, c_vectors], axis=1)
    og = jax.nn.sigmoid(ic @ weight.T + bias)
    return c_vectors * og


if __name__ == "__main__":
    key = jax.random.PRNGKey(0)

    def make_case(k, seq_len, input_size, hidden_size):
        output_size = hidden_size  # module requires O == H for c * og
        k_i, k_c, k_w, k_b = jax.random.split(k, 4)
        i_vec = jax.random.normal(k_i, (seq_len, input_size), dtype=jnp.float32)
        c_vec = jax.random.normal(k_c, (seq_len, hidden_size), dtype=jnp.float32)
        std = 1.0 / np.sqrt(output_size)
        weight = jax.random.uniform(
            k_w, (output_size, input_size + hidden_size),
            minval=-std, maxval=std, dtype=jnp.float32)
        bias = jax.random.uniform(
            k_b, (output_size,), minval=-std, maxval=std, dtype=jnp.float32)
        return i_vec, c_vec, weight, bias

    k1, k2 = jax.random.split(key)

    # Case 1: module shapes seq=8, input=32, hidden=output=32 (f32 compute).
    i_vec, c_vec, weight, bias = make_case(k1, 8, 32, 32)
    w_i, w_c, b2d = prepare_params(weight, bias, 32, compute_dtype=jnp.float32)
    out = jax.block_until_ready(second_module_forward(i_vec, c_vec, w_i, w_c, b2d))
    ref = _reference(i_vec, c_vec, weight, bias)
    np.testing.assert_allclose(np.asarray(out), np.asarray(ref),
                               rtol=1e-5, atol=1e-5)

    # Case 1b: same shapes on the default bf16-MXU perf path.
    w_i, w_c, b2d = prepare_params(weight, bias, 32)  # bf16 weights
    out_bf16 = jax.block_until_ready(
        second_module_forward(i_vec, c_vec, w_i, w_c, b2d))
    np.testing.assert_allclose(np.asarray(out_bf16), np.asarray(ref),
                               rtol=5e-2, atol=5e-2)

    # Case 2: exercise multi-tile grid + S/feature padding with a tiny tile:
    # seq=32, input=24, hidden=output=40, tile_s=8 -> grid of 4 steps.
    i_vec, c_vec, weight, bias = make_case(k2, 32, 24, 40)
    w_i, w_c, b2d = prepare_params(weight, bias, 24, compute_dtype=jnp.float32)
    out = jax.block_until_ready(
        second_module_forward(i_vec, c_vec, w_i, w_c, b2d, tile_s=8))
    ref = _reference(i_vec, c_vec, weight, bias)
    np.testing.assert_allclose(np.asarray(out), np.asarray(ref),
                               rtol=1e-5, atol=1e-5)

    print("KERNEL_OK")
</pallas_src>

<mosaic_0001>
module attributes {stable_mosaic.version = 11 : i64} {
  func.func @_second_module_kernel(%arg0: i32, %arg1: memref<8x128xf32, #tpu.memory_space<vmem>>, %arg2: memref<8x128xf32, #tpu.memory_space<vmem>>, %arg3: memref<128x128xf32, #tpu.memory_space<vmem>>, %arg4: memref<128x128xf32, #tpu.memory_space<vmem>>, %arg5: memref<1x128xf32, #tpu.memory_space<vmem>>, %arg6: memref<8x128xf32, #tpu.memory_space<vmem>>) attributes {dimension_semantics = [#tpu.dimension_semantics<parallel>], iteration_bounds = array<i64: 1>, scalar_prefetch = 0 : i64, scratch_operands = 0 : i64, tpu.core_type = #tpu.core_type<tc>, window_params = [{transform_indices = @transform_0, window_bounds = array<i64: 8, 128>}, {transform_indices = @transform_1, window_bounds = array<i64: 8, 128>}, {pipeline_mode = #tpu.pipeline_mode<synchronous>, transform_indices = @transform_2, window_bounds = array<i64: 128, 128>}, {pipeline_mode = #tpu.pipeline_mode<synchronous>, transform_indices = @transform_3, window_bounds = array<i64: 128, 128>}, {pipeline_mode = #tpu.pipeline_mode<synchronous>, transform_indices = @transform_4, window_bounds = array<i64: 1, 128>}, {transform_indices = @transform_5, window_bounds = array<i64: 8, 128>}]} {
    %c0 = arith.constant 0 : index
    %c0_0 = arith.constant 0 : index
    %0 = vector.load %arg2[%c0, %c0_0] : memref<8x128xf32, #tpu.memory_space<vmem>>, vector<8x128xf32>
    %c0_1 = arith.constant 0 : index
    %c0_2 = arith.constant 0 : index
    %1 = vector.load %arg1[%c0_1, %c0_2] : memref<8x128xf32, #tpu.memory_space<vmem>>, vector<8x128xf32>
    %c0_3 = arith.constant 0 : index
    %c0_4 = arith.constant 0 : index
    %2 = vector.load %arg3[%c0_3, %c0_4] : memref<128x128xf32, #tpu.memory_space<vmem>>, vector<128x128xf32>
    %cst = arith.constant dense<0.000000e+00> : vector<8x128xf32>
    %3 = tpu.matmul %1, %2, %cst {dimension_numbers = #tpu.dot_dimension_numbers<[1], [0], [0], [1], [0, 0, 1, 1], [], []>} : vector<8x128xf32>, vector<128x128xf32>, vector<8x128xf32> -> vector<8x128xf32>
    %c0_5 = arith.constant 0 : index
    %c0_6 = arith.constant 0 : index
    %4 = vector.load %arg2[%c0_5, %c0_6] : memref<8x128xf32, #tpu.memory_space<vmem>>, vector<8x128xf32>
    %c0_7 = arith.constant 0 : index
    %c0_8 = arith.constant 0 : index
    %5 = vector.load %arg4[%c0_7, %c0_8] : memref<128x128xf32, #tpu.memory_space<vmem>>, vector<128x128xf32>
    %cst_9 = arith.constant dense<0.000000e+00> : vector<8x128xf32>
    %6 = tpu.matmul %4, %5, %cst_9 {dimension_numbers = #tpu.dot_dimension_numbers<[1], [0], [0], [1], [0, 0, 1, 1], [], []>} : vector<8x128xf32>, vector<128x128xf32>, vector<8x128xf32> -> vector<8x128xf32>
    %7 = arith.addf %3, %6 : vector<8x128xf32>
    %c0_10 = arith.constant 0 : index
    %c0_11 = arith.constant 0 : index
    %8 = vector.load %arg5[%c0_10, %c0_11] : memref<1x128xf32, #tpu.memory_space<vmem>>, vector<1x128xf32>
    %9 = vector.broadcast %8 : vector<1x128xf32> to vector<8x128xf32>
    %10 = arith.addf %7, %9 : vector<8x128xf32>
    %cst_12 = arith.constant 5.000000e-01 : f32
    %11 = vector.broadcast %cst_12 : f32 to vector<8x128xf32>
    %12 = arith.mulf %11, %10 : vector<8x128xf32>
    %13 = math.tanh %12 : vector<8x128xf32>
    %cst_13 = arith.constant 1.000000e+00 : f32
    %14 = vector.broadcast %cst_13 : f32 to vector<8x128xf32>
    %15 = arith.addf %13, %14 : vector<8x128xf32>
    %cst_14 = arith.constant 5.000000e-01 : f32
    %16 = vector.broadcast %cst_14 : f32 to vector<8x128xf32>
    %17 = arith.mulf %16, %15 : vector<8x128xf32>
    %18 = arith.mulf %0, %17 : vector<8x128xf32>
    %c0_15 = arith.constant 0 : index
    %c0_16 = arith.constant 0 : index
    %19 = vector.load %arg6[%c0_15, %c0_16] : memref<8x128xf32, #tpu.memory_space<vmem>>, vector<8x128xf32>
    tpu.vector_store %arg6[%c0_15, %c0_16], %18 {strides = array<i32>} : memref<8x128xf32, #tpu.memory_space<vmem>>, vector<8x128xf32>,
    return
  }
  func.func @transform_0(%arg0: i32) -> (i32, i32) {
    %c0_i32 = arith.constant 0 : i32
    %c0_i32_0 = arith.constant 0 : i32
    return %arg0, %c0_i32 : i32, i32
  }
  func.func @transform_1(%arg0: i32) -> (i32, i32) {
    %c0_i32 = arith.constant 0 : i32
    %c0_i32_0 = arith.constant 0 : i32
    return %arg0, %c0_i32 : i32, i32
  }
  func.func @transform_2(%arg0: i32) -> (i32, i32) {
    %c0_i32 = arith.constant 0 : i32
    %c0_i32_0 = arith.constant 0 : i32
    %c0_i32_1 = arith.constant 0 : i32
    return %c0_i32, %c0_i32_0 : i32, i32
  }
  func.func @transform_3(%arg0: i32) -> (i32, i32) {
    %c0_i32 = arith.constant 0 : i32
    %c0_i32_0 = arith.constant 0 : i32
    %c0_i32_1 = arith.constant 0 : i32
    return %c0_i32, %c0_i32_0 : i32, i32
  }
  func.func @transform_4(%arg0: i32) -> (i32, i32) {
    %c0_i32 = arith.constant 0 : i32
    %c0_i32_0 = arith.constant 0 : i32
    %c0_i32_1 = arith.constant 0 : i32
    return %c0_i32, %c0_i32_0 : i32, i32
  }
  func.func @transform_5(%arg0: i32) -> (i32, i32) {
    %c0_i32 = arith.constant 0 : i32
    %c0_i32_0 = arith.constant 0 : i32
    return %arg0, %c0_i32 : i32, i32
  }
}

</mosaic_0001>

<bundles_post_ra>
// kernel: second_module_forward.1
= control target key start
LH: loop header
LB: loop body
LE: loop exit
PB: predicated region body
PF: predicated region fallthrough
CT: control target
= control target key end

     0   :  { %10 = vsyncpa [#allocation3], 0  ;;  %s587_s0 = inlined_call_operand.vmem [shape: f32[8,128], index: 0, kind: input, shape index: {}]   ;;  %s588_s1 = inlined_call_operand.vmem [shape: f32[8,128], index: 1, kind: input, shape index: {}]   ;;  %s589_s2 = inlined_call_operand.hbm [shape: f32[128,128], index: 2, kind: input, shape index: {}]   ;;  %s590_s3 = inlined_call_operand.hbm [shape: f32[128,128], index: 3, kind: input, shape index: {}]   ;;  %s591_s4 = inlined_call_operand.vmem [shape: f32[1,128], index: 4, kind: input, shape index: {}]   ;;  %s592_s5 = inlined_call_operand.hbm [shape: f32[8,128], index: 5, kind: output, shape index: {}]  }
   0x1   :  { %11 = vsyncpa [#allocation6], 0 }
   0x2   :  { %12 = vsyncpa [#allocation4], 0  ;;  %s488_s18 = smov [#allocation2]   ;;  %s416_s22 = scalar_lea.hbm %s589_s2, 2048 }
   0x3   :  { %s22_s19 = sshll.u32 %s488_s18, 4  ;;  %p417_p0 = scmp.ne.s32.totalorder %s589_s2, %s416_s22  ;;  %s23_s19 = int_to_ptr.vmem [resolvable:$true] %s22_s19 }
   0x4   :  { %p420_p1 = scmp.lt.u32.totalorder %s416_s22, %s589_s2 }
   0x6   :  { %p422_p2 = pnand %p420_p1, %p417_p0 }
   0x8   :  { %425 = shalt.err (!%p422_p2)
}
   0x9   :  { %s426_s27 = scalar_lea.vmem %s23_s19, 2048  ;;  %p431_p4 = scmp.lt.s32.totalorder %s23_s19, %s23_s19 }
   0xa   :  { %p427_p3 = scmp.ne.s32.totalorder %s23_s19, %s426_s27  ;;  %p432_p5 = scmp.lt.s32.totalorder %s426_s27, %s426_s27 }
   0xc   :  { %p433_p6 = por %p432_p5, %p431_p4 }
   0xe   :  { %p434_p7 = pnand %p433_p6, %p427_p3 }
  0x10   :  { %437 = shalt.err (!%p434_p7)
}
  0x11   :  { %s489_s28 = smov 128   ;;  %s490_s29 = smov 8  }
  0x12   :  { %28 = dma.hbm_to_vmem [thread:$0]  %s589_s2, 2048, %s23_s19, [#allocation3], %s489_s28, %s489_s28, %s490_s29  }
  0x13   :  { %s491_s7 = smov [#allocation5]   ;;  %s438_s11 = scalar_lea.hbm %s590_s3, 2048 }
  0x14   :  { %s34_s8 = sshll.u32 %s491_s7, 4  ;;  %p439_p8 = scmp.ne.s32.totalorder %s590_s3, %s438_s11  ;;  %s35_s8 = int_to_ptr.vmem [resolvable:$true] %s34_s8 }
  0x15   :  { %p442_p9 = scmp.lt.u32.totalorder %s438_s11, %s590_s3 }
  0x17   :  { %p444_p10 = pnand %p442_p9, %p439_p8 }
  0x19   :  { %447 = shalt.err (!%p444_p10)
}
  0x1a   :  { %s448_s16 = scalar_lea.vmem %s35_s8, 2048  ;;  %p453_p12 = scmp.lt.s32.totalorder %s35_s8, %s35_s8 }
  0x1b   :  { %p449_p11 = scmp.ne.s32.totalorder %s35_s8, %s448_s16  ;;  %p454_p13 = scmp.lt.s32.totalorder %s448_s16, %s448_s16 }
  0x1d   :  { %p455_p0 = por %p454_p13, %p453_p12 }
  0x1f   :  { %p456_p1 = pnand %p455_p0, %p449_p11 }
  0x21   :  { %459 = shalt.err (!%p456_p1)
}
  0x22   :  { %40 = dma.hbm_to_vmem [thread:$0]  %s590_s3, 2048, %s35_s8, [#allocation6], %s489_s28, %s489_s28, %s490_s29  }
  0x23   :  { %482 = dma.done.wait [#allocation3], 2048  }
  0x24   :  { %483 = vsyncadd [#allocation3], 4294965248 }
  0x25   :  { %484 = dma.done.wait [#allocation6], 2048  }
  0x26   :  { %485 = vsyncadd [#allocation6], 4294965248  ;;  %v492_v0 = vmov 0.0|0.0   ;;  %vm493_vm0 = vmmov 0   ;;  %v494_v1 = vmov 0.0   ;;  %v67_v2 = vld [vmem:[#allocation5] sm:$0xff] }
  0x27   :  { %358 = vmatprep.subr.bf16.mxu0 %v492_v0  ;;  %382 = vmatprep.subr.bf16.mxu1 %v492_v0  ;;  %v68_v3 = vld [vmem:[#allocation5 + $0x8] sm:$0xff]  ;;  %v51_v4 = vld [vmem:[#allocation2] sm:$0xff]  ;;  %v69_v7 = vld [vmem:[#allocation5 + $0x10] sm:$0xff] }
  0x28   :  { %320 = vmatprep.mubr.msk.f32.mxu0 %vm493_vm0, %v494_v1  ;;  %355 = vmatprep.mubr.msk.f32.mxu1 %vm493_vm0, %v494_v1  ;;  %v359_v5 = vpack.c.bf16 %v68_v3, %v67_v2  ;;  %v52_v6 = vld [vmem:[#allocation2 + $0x8] sm:$0xff]  ;;  %v70_v8 = vld [vmem:[#allocation5 + $0x18] sm:$0xff]  ;;  %v53_v10 = vld [vmem:[#allocation2 + $0x10] sm:$0xff] }
  0x29   :  { %v383_v9 = vpack.c.bf16 %v52_v6, %v51_v4  ;;  %v54_v11 = vld [vmem:[#allocation2 + $0x18] sm:$0xff]  ;;  %v362_v12 = vpack.c.bf16 %v70_v8, %v69_v7  ;;  %v71_v14 = vld [vmem:[#allocation5 + $0x20] sm:$0xff]  ;;  %v72_v15 = vld [vmem:[#allocation5 + $0x28] sm:$0xff] }
  0x2a   :  { %360 = vmatpush3.bf16.msra.mxu0 %v359_v5  ;;  %v386_v13 = vpack.c.bf16 %v54_v11, %v53_v10  ;;  %v55_v16 = vld [vmem:[#allocation2 + $0x20] sm:$0xff]  ;;  %v56_v17 = vld [vmem:[#allocation2 + $0x28] sm:$0xff]  ;;  %v365_v18 = vpack.c.bf16 %v72_v15, %v71_v14  ;;  %v73_v20 = vld [vmem:[#allocation5 + $0x30] sm:$0xff] }
  0x2b   :  { %384 = vmatpush3.bf16.msra.mxu1 %v383_v9  ;;  %361 = vmatprep.subr.bf16.mxu0 %v492_v0  ;;  %v389_v19 = vpack.c.bf16 %v56_v17, %v55_v16  ;;  %v74_v21 = vld [vmem:[#allocation5 + $0x38] sm:$0xff]  ;;  %v57_v22 = vld [vmem:[#allocation2 + $0x30] sm:$0xff]  ;;  %v75_v26 = vld [vmem:[#allocation5 + $0x40] sm:$0xff] }
  0x2c   :  { %385 = vmatprep.subr.bf16.mxu1 %v492_v0  ;;  %v58_v23 = vld [vmem:[#allocation2 + $0x38] sm:$0xff]  ;;  %v368_v24 = vpack.c.bf16 %v74_v21, %v73_v20  ;;  %v76_v27 = vld [vmem:[#allocation5 + $0x48] sm:$0xff]  ;;  %v59_v28 = vld [vmem:[#allocation2 + $0x40] sm:$0xff] }
  0x2d   :  { %v392_v25 = vpack.c.bf16 %v58_v23, %v57_v22  ;;  %v60_v29 = vld [vmem:[#allocation2 + $0x48] sm:$0xff]  ;;  %v371_v30 = vpack.c.bf16 %v76_v27, %v75_v26  ;;  %v77_v32 = vld [vmem:[#allocation5 + $0x50] sm:$0xff]  ;;  %v78_v33 = vld [vmem:[#allocation5 + $0x58] sm:$0xff] }
  0x2e   :  { %363 = vmatpush3.bf16.msra.mxu0 %v362_v12  ;;  %v395_v31 = vpack.c.bf16 %v60_v29, %v59_v28  ;;  %v61_v34 = vld [vmem:[#allocation2 + $0x50] sm:$0xff]  ;;  %v62_v35 = vld [vmem:[#allocation2 + $0x58] sm:$0xff]  ;;  %v374_v36 = vpack.c.bf16 %v78_v33, %v77_v32  ;;  %v79_v38 = vld [vmem:[#allocation5 + $0x60] sm:$0xff] }
  0x2f   :  { %387 = vmatpush3.bf16.msra.mxu1 %v386_v13  ;;  %364 = vmatprep.subr.bf16.mxu0 %v492_v0  ;;  %v398_v37 = vpack.c.bf16 %v62_v35, %v61_v34  ;;  %v80_v39 = vld [vmem:[#allocation5 + $0x68] sm:$0xff]  ;;  %v63_v40 = vld [vmem:[#allocation2 + $0x60] sm:$0xff]  ;;  %v81_v44 = vld [vmem:[#allocation5 + $0x70] sm:$0xff] }
  0x30   :  { %388 = vmatprep.subr.bf16.mxu1 %v492_v0  ;;  %v64_v41 = vld [vmem:[#allocation2 + $0x68] sm:$0xff]  ;;  %v377_v42 = vpack.c.bf16 %v80_v39, %v79_v38  ;;  %v82_v45 = vld [vmem:[#allocation5 + $0x78] sm:$0xff]  ;;  %v65_v46 = vld [vmem:[#allocation2 + $0x70] sm:$0xff] }
  0x31   :  { %v401_v43 = vpack.c.bf16 %v64_v41, %v63_v40  ;;  %v66_v47 = vld [vmem:[#allocation2 + $0x78] sm:$0xff]  ;;  %v380_v48 = vpack.c.bf16 %v82_v45, %v81_v44  ;;  %v49_v50 = vld [vmem:[%s588_s1] sm:$0xff]  ;;  %s495_s1 = smov [#allocation7]  }
  0x32   :  { %366 = vmatpush3.bf16.msra.mxu0 %v365_v18  ;;  %v404_v49 = vpack.c.bf16 %v66_v47, %v65_v46  ;;  %v50_v51 = vld [vmem:[%s587_s0] sm:$0xff]  ;;  %s243_s23 = sshll.u32 %s495_s1, 4  ;;  %s244_s23 = int_to_ptr.vmem [resolvable:$true] %s243_s23 }
  0x33   :  { %390 = vmatpush3.bf16.msra.mxu1 %v389_v19  ;;  %367 = vmatprep.subr.bf16.mxu0 %v492_v0  ;;  %v253_v54 = vld [vmem:[%s591_s4] ss:$0 sm:$0xff]  ;;  %s460_s0 = scalar_lea.vmem %s244_s23, 128  ;;  %p465_p3 = scmp.lt.s32.totalorder %s244_s23, %s244_s23 }
  0x34   :  { %391 = vmatprep.subr.bf16.mxu1 %v492_v0  ;;  %p461_p2 = scmp.ne.s32.totalorder %s244_s23, %s460_s0  ;;  %p466_p4 = scmp.lt.s32.totalorder %s460_s0, %s460_s0 }
  0x36   :  { %369 = vmatpush3.bf16.msra.mxu0 %v368_v24  ;;  %p467_p5 = por %p466_p4, %p465_p3 }
  0x37   :  { %393 = vmatpush3.bf16.msra.mxu1 %v392_v25  ;;  %370 = vmatprep.subr.bf16.mxu0 %v492_v0 }
  0x38   :  { %394 = vmatprep.subr.bf16.mxu1 %v492_v0  ;;  %p468_p6 = pnand %p467_p5, %p461_p2 }
  0x3a   :  { %372 = vmatpush3.bf16.msra.mxu0 %v371_v30 }
  0x3b   :  { %396 = vmatpush3.bf16.msra.mxu1 %v395_v31  ;;  %373 = vmatprep.subr.bf16.mxu0 %v492_v0 }
  0x3c   :  { %397 = vmatprep.subr.bf16.mxu1 %v492_v0 }
  0x3e   :  { %375 = vmatpush3.bf16.msra.mxu0 %v374_v36 }
  0x3f   :  { %399 = vmatpush3.bf16.msra.mxu1 %v398_v37  ;;  %376 = vmatprep.subr.bf16.mxu0 %v492_v0 }
  0x40   :  { %400 = vmatprep.subr.bf16.mxu1 %v492_v0 }
  0x42   :  { %378 = vmatpush3.bf16.msra.mxu0 %v377_v42 }
  0x43   :  { %402 = vmatpush3.bf16.msra.mxu1 %v401_v43  ;;  %379 = vmatprep.subr.bf16.mxu0 %v492_v0 }
  0x44   :  { %403 = vmatprep.subr.bf16.mxu1 %v492_v0 }
  0x46   :  { %381 = vmatpush3.bf16.msra.mxu0 %v380_v48 }
  0x47   :  { %405 = vmatpush3.bf16.msra.mxu1 %v404_v49 }
  0x49   :  { %321 = vmatmul.mubr.f32.vlgmr.msra.gmra.mrb[0].mxu0 %v49_v50 }
  0x4a   :  { %356 = vmatmul.mubr.f32.vlgmr.msra.gmra.mrb[0].mxu1 %v50_v51 }
 0x11c   :  { %v149_v52 = vpop.f32.mrb[0].mxu0 }
 0x11d   :  { %v219_v53 = vpop.f32.mrb[0].mxu1  ;;  %v322_v55 = vpop.f32.mrb[1].mxu0 }
 0x11e   :  { %v220_v56 = vadd.f32 %v219_v53, %v149_v52  ;;  %v357_v57 = vpop.f32.mrb[1].mxu1 }
 0x120   :  { %v230_v58 = vadd.f32 %v253_v54, %v220_v56 }
 0x122   :  { %v231_v59 = vmul.f32 0.5, %v230_v58 }
 0x124   :  { %414 = vtanh.f32 %v231_v59 }
 0x12e   :  { %v415_v60 = vpop.eup %414 }
 0x12f   :  { %v233_v61 = vadd.f32 1.0, %v415_v60 }
 0x131   :  { %v234_v62 = vmul.f32 0.5, %v233_v61 }
 0x133   :  { %v235_v63 = vmul.f32 %v234_v62, %v49_v50 }
 0x135   :  { %236 = vst [vmem:[#allocation7] sm:$0xff] %v235_v63 }
 0x136   :  { %471 = shalt.err (!%p468_p6)
}
 0x137   :  { %s472_s25 = scalar_lea.hbm %s592_s5, 128 }
 0x138   :  { %p473_p7 = scmp.ne.s32.totalorder %s592_s5, %s472_s25  ;;  %p476_p8 = scmp.lt.u32.totalorder %s472_s25, %s592_s5 }
 0x13a   :  { %p478_p9 = pnand %p476_p8, %p473_p7 }
 0x13c   :  { %481 = shalt.err (!%p478_p9)
}
 0x13d   :  { %246 = dma.vmem_to_hbm [thread:$0]  %s244_s23, 128, %s592_s5, [#allocation4]  }
 0x13e   :  { %486 = dma.done.wait [#allocation4], 128  }
 0x13f   :  { %487 = vsyncadd [#allocation4], 4294967168 }
 0x140   :  { %250 = vsyncpa [#allocation3], 1 }
 0x141   :  { %251 = vsyncpa [#allocation6], 1 }
 0x142   :  { %252 = vsyncpa [#allocation4], 1 }

</bundles_post_ra>
